<compile_context>
chip_gen: v6e
topology: v6e:2x2x1
jax: 0.10.0
libtpu: 0.0.40
codegen_flags: <defaults>
</compile_context>

<pallas_src>
import math
import jax
import jax.numpy as jnp
from jax.experimental import pallas as pl
from jax.experimental.pallas import tpu as pltpu

NUM_ACTIONS = 51
INPUT_DIM = 7
LN_EPS = 1e-5
LEAKY_SLOPE = 0.01                 # PyTorch nn.LeakyReLU default
_INV_SQRT2 = 1.0 / math.sqrt(2.0)


def _round_up(x, m):
    return ((x + m - 1) // m) * m


def _layernorm_1pass(h, gamma, beta):
    # Single data pass: both reductions feed from h / h*h.
    mu = jnp.mean(h, axis=-1, keepdims=True)
    var = jnp.mean(h * h, axis=-1, keepdims=True) - mu * mu
    return (h - mu) * jax.lax.rsqrt(var + LN_EPS) * gamma + beta


def mcpg_kernel(x_ref, w1_ref, w2_ref, w3_ref, w4_ref, w5_ref, vec_ref, o_ref):
    x = x_ref[...]            # (TB, 7) f32
    vec = vec_ref[...]        # (8, 128) packed biases / LN params
    out_w = o_ref.shape[-1]   # static padded logits width (64 or 128)

    b1 = vec[0:1, :]
    g1 = vec[1:2, :]
    be1 = vec[2:3, :]
    b2 = vec[3:4, :]
    g2 = vec[4:5, :]
    be2 = vec[5:6, :]
    b3 = vec[6:7, 0:64]
    b4 = vec[6:7, 64:128]
    b5 = vec[7:8, 0:out_w]    # cols 51..out_w-1 are zero

    # Linear(7->128) + LayerNorm + LeakyReLU (+ Dropout: identity in eval)
    h = jnp.dot(x, w1_ref[...], preferred_element_type=jnp.float32) + b1
    h = _layernorm_1pass(h, g1, be1)
    h = jnp.where(h > 0, h, LEAKY_SLOPE * h)

    # Linear(128->128) + LayerNorm + GELU (exact erf, PyTorch default) (+ Dropout)
    h = jnp.dot(h, w2_ref[...], preferred_element_type=jnp.float32) + b2
    h = _layernorm_1pass(h, g2, be2)
    h = 0.5 * h * (1.0 + jax.lax.erf(h * _INV_SQRT2))

    # Linear(128->64) + Tanh
    h = jnp.tanh(jnp.dot(h, w3_ref[...], preferred_element_type=jnp.float32) + b3)

    # Linear(64->64) + ReLU
    h = jnp.maximum(jnp.dot(h, w4_ref[...], preferred_element_type=jnp.float32) + b4, 0.0)

    # Linear(64->51) padded to out_w lanes -> raw logits
    o_ref[...] = jnp.dot(h, w5_ref[...], preferred_element_type=jnp.float32) + b5


def _pack_params(params, out_pad):
    """Pack the 14 raw params into 6 kernel arrays (done once per call)."""
    (w1, b1, g1, be1, w2, b2, g2, be2, w3, b3, w4, b4, w5, b5) = params
    w5p = jnp.zeros((64, out_pad), jnp.float32).at[:, :NUM_ACTIONS].set(w5)
    vec = jnp.zeros((8, 128), jnp.float32)
    vec = vec.at[0, :].set(b1.reshape(-1))
    vec = vec.at[1, :].set(g1.reshape(-1))
    vec = vec.at[2, :].set(be1.reshape(-1))
    vec = vec.at[3, :].set(b2.reshape(-1))
    vec = vec.at[4, :].set(g2.reshape(-1))
    vec = vec.at[5, :].set(be2.reshape(-1))
    vec = vec.at[6, :64].set(b3.reshape(-1))
    vec = vec.at[6, 64:].set(b4.reshape(-1))
    vec = vec.at[7, :NUM_ACTIONS].set(b5.reshape(-1))
    return w1, w2, w3, w4, w5p, vec


def mcpg_position_network(features, params, block_b=1024, out_pad=64):
    """features: (B, 7) float32 -> logits (B, 51) float32.

    out_pad: padded logits width. 64 halves write traffic (recommended on
    v5e/v6e where writeback bandwidth dominates); 128 gives lane-dense
    unmasked stores (preferred on v7x).
    """
    B = features.shape[0]
    x = features.astype(jnp.float32)

    # Batch tile: multiple of 8; capped at half the (8-rounded) batch so the
    # "parallel" grid axis has >= 2 steps whenever possible (v7x megacore).
    tb_req = max(8, (int(block_b) // 8) * 8)
    tb_cap = max(8, _round_up(pl.cdiv(_round_up(B, 8), 2), 8))
    TB = min(tb_req, tb_cap)

    # Pad the batch only when it does not divide the tile; zero rows are
    # harmless through LayerNorm and are sliced away below.
    Bp = _round_up(B, TB)
    if Bp != B:
        x = jnp.zeros((Bp, INPUT_DIM), jnp.float32).at[:B, :].set(x)

    w1, w2, w3, w4, w5p, vec = _pack_params(params, out_pad)

    const = lambda i: (0, 0)   # resident-in-VMEM params (DMA'd once)
    out = pl.pallas_call(
        mcpg_kernel,
        out_shape=jax.ShapeDtypeStruct((Bp, out_pad), jnp.float32),
        grid_spec=pltpu.PrefetchScalarGridSpec(
            num_scalar_prefetch=0,
            grid=(Bp // TB,),
            in_specs=[
                pl.BlockSpec((TB, INPUT_DIM), lambda i: (i, 0)),  # x block (K=7)
                pl.BlockSpec((INPUT_DIM, 128), const),            # W1
                pl.BlockSpec((128, 128), const),                  # W2
                pl.BlockSpec((128, 64), const),                   # W3
                pl.BlockSpec((64, 64), const),                    # W4
                pl.BlockSpec((64, out_pad), const),               # W5 (padded)
                pl.BlockSpec((8, 128), const),                    # packed vectors
            ],
            out_specs=pl.BlockSpec((TB, out_pad), lambda i: (i, 0)),
        ),
        compiler_params=pltpu.CompilerParams(
            dimension_semantics=("parallel",)),
    )(x, w1, w2, w3, w4, w5p, vec)

    return out[:B, :NUM_ACTIONS]


def init_params(key):
    """Deterministic parameter init (PyTorch-style uniform bounds)."""
    def linear(k, fan_in, fan_out):
        k1, k2 = jax.random.split(k)
        bound = 1.0 / math.sqrt(fan_in)
        w = jax.random.uniform(k1, (fan_in, fan_out), jnp.float32, -bound, bound)
        b = jax.random.uniform(k2, (1, fan_out), jnp.float32, -bound, bound)
        return w, b

    ks = jax.random.split(key, 5)
    w1, b1 = linear(ks[0], INPUT_DIM, 128)
    g1 = jnp.ones((1, 128), jnp.float32)
    be1 = jnp.zeros((1, 128), jnp.float32)
    w2, b2 = linear(ks[1], 128, 128)
    g2 = jnp.ones((1, 128), jnp.float32)
    be2 = jnp.zeros((1, 128), jnp.float32)
    w3, b3 = linear(ks[2], 128, 64)
    w4, b4 = linear(ks[3], 64, 64)
    w5, b5 = linear(ks[4], 64, NUM_ACTIONS)
    return [w1, b1, g1, be1, w2, b2, g2, be2, w3, b3, w4, b4, w5, b5]


def reference_forward(features, p):
    """Pure-JAX reference (faithful two-pass LayerNorm variance)."""
    (w1, b1, g1, be1, w2, b2, g2, be2, w3, b3, w4, b4, w5, b5) = p

    def ln(h, g, b):
        mu = jnp.mean(h, axis=-1, keepdims=True)
        var = jnp.mean((h - mu) * (h - mu), axis=-1, keepdims=True)
        return (h - mu) * jax.lax.rsqrt(var + LN_EPS) * g + b

    h = features @ w1 + b1
    h = ln(h, g1, be1)
    h = jnp.where(h > 0, h, LEAKY_SLOPE * h)
    h = h @ w2 + b2
    h = ln(h, g2, be2)
    h = 0.5 * h * (1.0 + jax.lax.erf(h * _INV_SQRT2))
    h = jnp.tanh(h @ w3 + b3)
    h = jnp.maximum(h @ w4 + b4, 0.0)
    return h @ w5 + b5


if __name__ == "__main__":
    key = jax.random.PRNGKey(0)
    pkey, okey = jax.random.split(key)
    params = init_params(pkey)

    # Batch of 16 observations; each row is the 7-dim feature vector the
    # PyTorch forward assembles from the obs dict:
    #   [position, normalized_stock_price, time_to_expiry,
    #    normalized_portfolio_value, delta, gamma, volatility]
    B = 16
    features = jax.random.uniform(okey, (B, INPUT_DIM), jnp.float32)
    ref = reference_forward(features, params)

    # Default path: TB capped to 8 here -> 2 grid steps (exercises pipelining
    # and the v7x two-step guarantee), 64-wide padded output.
    logits = mcpg_position_network(features, params)
    logits = jax.block_until_ready(logits)
    assert logits.shape == (B, NUM_ACTIONS)
    assert jnp.allclose(logits, ref, atol=1e-4, rtol=1e-4), "mismatch vs JAX reference"

    # Lane-dense 128-wide output variant (preferred on v7x).
    logits128 = mcpg_position_network(features, params, out_pad=128)
    logits128 = jax.block_until_ready(logits128)
    assert jnp.allclose(logits128, ref, atol=1e-4, rtol=1e-4)

    # Single-observation path (as in the original module's forward);
    # exercises the conditional batch pad (1 -> 8 rows).
    logits1 = mcpg_position_network(features[:1], params)
    logits1 = jax.block_until_ready(logits1)
    assert logits1.shape == (1, NUM_ACTIONS)
    assert jnp.allclose(logits1, ref[:1], atol=1e-4, rtol=1e-4)

    print("KERNEL_OK")
</pallas_src>

<mosaic_0001>
module attributes {stable_mosaic.version = 11 : i64} {
  func.func @mcpg_kernel(%arg0: i32, %arg1: memref<8x7xf32, #tpu.memory_space<vmem>>, %arg2: memref<7x128xf32, #tpu.memory_space<vmem>>, %arg3: memref<128x128xf32, #tpu.memory_space<vmem>>, %arg4: memref<128x64xf32, #tpu.memory_space<vmem>>, %arg5: memref<64x64xf32, #tpu.memory_space<vmem>>, %arg6: memref<64x64xf32, #tpu.memory_space<vmem>>, %arg7: memref<8x128xf32, #tpu.memory_space<vmem>>, %arg8: memref<8x64xf32, #tpu.memory_space<vmem>>) attributes {dimension_semantics = [#tpu.dimension_semantics<parallel>], iteration_bounds = array<i64: 2>, scalar_prefetch = 0 : i64, scratch_operands = 0 : i64, tpu.core_type = #tpu.core_type<tc>, window_params = [{transform_indices = @transform_0, window_bounds = array<i64: 8, 7>}, {pipeline_mode = #tpu.pipeline_mode<synchronous>, transform_indices = @transform_1, window_bounds = array<i64: 7, 128>}, {pipeline_mode = #tpu.pipeline_mode<synchronous>, transform_indices = @transform_2, window_bounds = array<i64: 128, 128>}, {pipeline_mode = #tpu.pipeline_mode<synchronous>, transform_indices = @transform_3, window_bounds = array<i64: 128, 64>}, {pipeline_mode = #tpu.pipeline_mode<synchronous>, transform_indices = @transform_4, window_bounds = array<i64: 64, 64>}, {pipeline_mode = #tpu.pipeline_mode<synchronous>, transform_indices = @transform_5, window_bounds = array<i64: 64, 64>}, {pipeline_mode = #tpu.pipeline_mode<synchronous>, transform_indices = @transform_6, window_bounds = array<i64: 8, 128>}, {transform_indices = @transform_7, window_bounds = array<i64: 8, 64>}]} {
    %c0 = arith.constant 0 : index
    %c0_0 = arith.constant 0 : index
    %0 = vector.load %arg1[%c0, %c0_0] : memref<8x7xf32, #tpu.memory_space<vmem>>, vector<8x7xf32>
    %c0_1 = arith.constant 0 : index
    %c0_2 = arith.constant 0 : index
    %1 = vector.load %arg7[%c0_1, %c0_2] : memref<8x128xf32, #tpu.memory_space<vmem>>, vector<8x128xf32>
    %2 = vector.extract_strided_slice %1 {offsets = [0, 0], sizes = [1, 128], strides = [1, 1]} : vector<8x128xf32> to vector<1x128xf32>
    %3 = vector.extract_strided_slice %1 {offsets = [1, 0], sizes = [1, 128], strides = [1, 1]} : vector<8x128xf32> to vector<1x128xf32>
    %4 = vector.extract_strided_slice %1 {offsets = [2, 0], sizes = [1, 128], strides = [1, 1]} : vector<8x128xf32> to vector<1x128xf32>
    %5 = vector.extract_strided_slice %1 {offsets = [3, 0], sizes = [1, 128], strides = [1, 1]} : vector<8x128xf32> to vector<1x128xf32>
    %6 = vector.extract_strided_slice %1 {offsets = [4, 0], sizes = [1, 128], strides = [1, 1]} : vector<8x128xf32> to vector<1x128xf32>
    %7 = vector.extract_strided_slice %1 {offsets = [5, 0], sizes = [1, 128], strides = [1, 1]} : vector<8x128xf32> to vector<1x128xf32>
    %8 = vector.extract_strided_slice %1 {offsets = [6, 0], sizes = [1, 64], strides = [1, 1]} : vector<8x128xf32> to vector<1x64xf32>
    %9 = vector.extract_strided_slice %1 {offsets = [6, 64], sizes = [1, 64], strides = [1, 1]} : vector<8x128xf32> to vector<1x64xf32>
    %10 = vector.extract_strided_slice %1 {offsets = [7, 0], sizes = [1, 64], strides = [1, 1]} : vector<8x128xf32> to vector<1x64xf32>
    %c0_3 = arith.constant 0 : index
    %c0_4 = arith.constant 0 : index
    %11 = vector.load %arg2[%c0_3, %c0_4] : memref<7x128xf32, #tpu.memory_space<vmem>>, vector<7x128xf32>
    %cst = arith.constant dense<0.000000e+00> : vector<8x128xf32>
    %12 = tpu.matmul %0, %11, %cst {dimension_numbers = #tpu.dot_dimension_numbers<[1], [0], [0], [1], [0, 0, 1, 1], [], []>} : vector<8x7xf32>, vector<7x128xf32>, vector<8x128xf32> -> vector<8x128xf32>
    %13 = vector.broadcast %2 : vector<1x128xf32> to vector<8x128xf32>
    %14 = arith.addf %12, %13 : vector<8x128xf32>
    %cst_5 = arith.constant dense<0.000000e+00> : vector<8xf32>
    %15 = vector.multi_reduction <add>, %14, %cst_5 [1] : vector<8x128xf32> to vector<8xf32>
    %16 = vector.shape_cast %15 : vector<8xf32> to vector<8x1xf32>
    %cst_6 = arith.constant 1.280000e+02 : f32
    %17 = vector.broadcast %cst_6 : f32 to vector<8x1xf32>
    %18 = arith.divf %16, %17 : vector<8x1xf32>
    %19 = arith.mulf %14, %14 : vector<8x128xf32>
    %cst_7 = arith.constant dense<0.000000e+00> : vector<8xf32>
    %20 = vector.multi_reduction <add>, %19, %cst_7 [1] : vector<8x128xf32> to vector<8xf32>
    %21 = vector.shape_cast %20 : vector<8xf32> to vector<8x1xf32>
    %cst_8 = arith.constant 1.280000e+02 : f32
    %22 = vector.broadcast %cst_8 : f32 to vector<8x1xf32>
    %23 = arith.divf %21, %22 : vector<8x1xf32>
    %24 = arith.mulf %18, %18 : vector<8x1xf32>
    %25 = arith.subf %23, %24 : vector<8x1xf32>
    %26 = vector.broadcast %18 : vector<8x1xf32> to vector<8x128xf32>
    %27 = arith.subf %14, %26 : vector<8x128xf32>
    %cst_9 = arith.constant 9.99999974E-6 : f32
    %28 = vector.broadcast %cst_9 : f32 to vector<8x1xf32>
    %29 = arith.addf %25, %28 : vector<8x1xf32>
    %30 = math.rsqrt %29 : vector<8x1xf32>
    %31 = vector.broadcast %30 : vector<8x1xf32> to vector<8x128xf32>
    %32 = arith.mulf %27, %31 : vector<8x128xf32>
    %33 = vector.broadcast %3 : vector<1x128xf32> to vector<8x128xf32>
    %34 = arith.mulf %32, %33 : vector<8x128xf32>
    %35 = vector.broadcast %4 : vector<1x128xf32> to vector<8x128xf32>
    %36 = arith.addf %34, %35 : vector<8x128xf32>
    %cst_10 = arith.constant 0.000000e+00 : f32
    %37 = vector.broadcast %cst_10 : f32 to vector<8x128xf32>
    %38 = arith.cmpf ogt, %36, %37 : vector<8x128xf32>
    %cst_11 = arith.constant 0.00999999977 : f32
    %39 = vector.broadcast %cst_11 : f32 to vector<8x128xf32>
    %40 = arith.mulf %39, %36 : vector<8x128xf32>
    %41 = arith.select %38, %36, %40 : vector<8x128xi1>, vector<8x128xf32>
    %c0_12 = arith.constant 0 : index
    %c0_13 = arith.constant 0 : index
    %42 = vector.load %arg3[%c0_12, %c0_13] : memref<128x128xf32, #tpu.memory_space<vmem>>, vector<128x128xf32>
    %cst_14 = arith.constant dense<0.000000e+00> : vector<8x128xf32>
    %43 = tpu.matmul %41, %42, %cst_14 {dimension_numbers = #tpu.dot_dimension_numbers<[1], [0], [0], [1], [0, 0, 1, 1], [], []>} : vector<8x128xf32>, vector<128x128xf32>, vector<8x128xf32> -> vector<8x128xf32>
    %44 = vector.broadcast %5 : vector<1x128xf32> to vector<8x128xf32>
    %45 = arith.addf %43, %44 : vector<8x128xf32>
    %cst_15 = arith.constant dense<0.000000e+00> : vector<8xf32>
    %46 = vector.multi_reduction <add>, %45, %cst_15 [1] : vector<8x128xf32> to vector<8xf32>
    %47 = vector.shape_cast %46 : vector<8xf32> to vector<8x1xf32>
    %cst_16 = arith.constant 1.280000e+02 : f32
    %48 = vector.broadcast %cst_16 : f32 to vector<8x1xf32>
    %49 = arith.divf %47, %48 : vector<8x1xf32>
    %50 = arith.mulf %45, %45 : vector<8x128xf32>
    %cst_17 = arith.constant dense<0.000000e+00> : vector<8xf32>
    %51 = vector.multi_reduction <add>, %50, %cst_17 [1] : vector<8x128xf32> to vector<8xf32>
    %52 = vector.shape_cast %51 : vector<8xf32> to vector<8x1xf32>
    %cst_18 = arith.constant 1.280000e+02 : f32
    %53 = vector.broadcast %cst_18 : f32 to vector<8x1xf32>
    %54 = arith.divf %52, %53 : vector<8x1xf32>
    %55 = arith.mulf %49, %49 : vector<8x1xf32>
    %56 = arith.subf %54, %55 : vector<8x1xf32>
    %57 = vector.broadcast %49 : vector<8x1xf32> to vector<8x128xf32>
    %58 = arith.subf %45, %57 : vector<8x128xf32>
    %cst_19 = arith.constant 9.99999974E-6 : f32
    %59 = vector.broadcast %cst_19 : f32 to vector<8x1xf32>
    %60 = arith.addf %56, %59 : vector<8x1xf32>
    %61 = math.rsqrt %60 : vector<8x1xf32>
    %62 = vector.broadcast %61 : vector<8x1xf32> to vector<8x128xf32>
    %63 = arith.mulf %58, %62 : vector<8x128xf32>
    %64 = vector.broadcast %6 : vector<1x128xf32> to vector<8x128xf32>
    %65 = arith.mulf %63, %64 : vector<8x128xf32>
    %66 = vector.broadcast %7 : vector<1x128xf32> to vector<8x128xf32>
    %67 = arith.addf %65, %66 : vector<8x128xf32>
    %cst_20 = arith.constant 5.000000e-01 : f32
    %68 = vector.broadcast %cst_20 : f32 to vector<8x128xf32>
    %69 = arith.mulf %68, %67 : vector<8x128xf32>
    %cst_21 = arith.constant 0.707106769 : f32
    %70 = vector.broadcast %cst_21 : f32 to vector<8x128xf32>
    %71 = arith.mulf %67, %70 : vector<8x128xf32>
    %72 = math.erf %71 : vector<8x128xf32>
    %cst_22 = arith.constant 1.000000e+00 : f32
    %73 = vector.broadcast %cst_22 : f32 to vector<8x128xf32>
    %74 = arith.addf %73, %72 : vector<8x128xf32>
    %75 = arith.mulf %69, %74 : vector<8x128xf32>
    %c0_23 = arith.constant 0 : index
    %c0_24 = arith.constant 0 : index
    %76 = vector.load %arg4[%c0_23, %c0_24] : memref<128x64xf32, #tpu.memory_space<vmem>>, vector<128x64xf32>
    %cst_25 = arith.constant dense<0.000000e+00> : vector<8x64xf32>
    %77 = tpu.matmul %75, %76, %cst_25 {dimension_numbers = #tpu.dot_dimension_numbers<[1], [0], [0], [1], [0, 0, 1, 1], [], []>} : vector<8x128xf32>, vector<128x64xf32>, vector<8x64xf32> -> vector<8x64xf32>
    %78 = vector.broadcast %8 : vector<1x64xf32> to vector<8x64xf32>
    %79 = arith.addf %77, %78 : vector<8x64xf32>
    %80 = math.tanh %79 : vector<8x64xf32>
    %c0_26 = arith.constant 0 : index
    %c0_27 = arith.constant 0 : index
    %81 = vector.load %arg5[%c0_26, %c0_27] : memref<64x64xf32, #tpu.memory_space<vmem>>, vector<64x64xf32>
    %cst_28 = arith.constant dense<0.000000e+00> : vector<8x64xf32>
    %82 = tpu.matmul %80, %81, %cst_28 {dimension_numbers = #tpu.dot_dimension_numbers<[1], [0], [0], [1], [0, 0, 1, 1], [], []>} : vector<8x64xf32>, vector<64x64xf32>, vector<8x64xf32> -> vector<8x64xf32>
    %83 = vector.broadcast %9 : vector<1x64xf32> to vector<8x64xf32>
    %84 = arith.addf %82, %83 : vector<8x64xf32>
    %cst_29 = arith.constant 0.000000e+00 : f32
    %85 = vector.broadcast %cst_29 : f32 to vector<8x64xf32>
    %86 = arith.maximumf %84, %85 : vector<8x64xf32>
    %c0_30 = arith.constant 0 : index
    %c0_31 = arith.constant 0 : index
    %87 = vector.load %arg6[%c0_30, %c0_31] : memref<64x64xf32, #tpu.memory_space<vmem>>, vector<64x64xf32>
    %cst_32 = arith.constant dense<0.000000e+00> : vector<8x64xf32>
    %88 = tpu.matmul %86, %87, %cst_32 {dimension_numbers = #tpu.dot_dimension_numbers<[1], [0], [0], [1], [0, 0, 1, 1], [], []>} : vector<8x64xf32>, vector<64x64xf32>, vector<8x64xf32> -> vector<8x64xf32>
    %89 = vector.broadcast %10 : vector<1x64xf32> to vector<8x64xf32>
    %90 = arith.addf %88, %89 : vector<8x64xf32>
    %c0_33 = arith.constant 0 : index
    %c0_34 = arith.constant 0 : index
    %91 = vector.load %arg8[%c0_33, %c0_34] : memref<8x64xf32, #tpu.memory_space<vmem>>, vector<8x64xf32>
    tpu.vector_store %arg8[%c0_33, %c0_34], %90 {strides = array<i32>} : memref<8x64xf32, #tpu.memory_space<vmem>>, vector<8x64xf32>,
    return
  }
  func.func @transform_0(%arg0: i32) -> (i32, i32) {
    %c0_i32 = arith.constant 0 : i32
    %c0_i32_0 = arith.constant 0 : i32
    return %arg0, %c0_i32 : i32, i32
  }
  func.func @transform_1(%arg0: i32) -> (i32, i32) {
    %c0_i32 = arith.constant 0 : i32
    %c0_i32_0 = arith.constant 0 : i32
    %c0_i32_1 = arith.constant 0 : i32
    return %c0_i32, %c0_i32_0 : i32, i32
  }
  func.func @transform_2(%arg0: i32) -> (i32, i32) {
    %c0_i32 = arith.constant 0 : i32
    %c0_i32_0 = arith.constant 0 : i32
    %c0_i32_1 = arith.constant 0 : i32
    return %c0_i32, %c0_i32_0 : i32, i32
  }
  func.func @transform_3(%arg0: i32) -> (i32, i32) {
    %c0_i32 = arith.constant 0 : i32
    %c0_i32_0 = arith.constant 0 : i32
    %c0_i32_1 = arith.constant 0 : i32
    return %c0_i32, %c0_i32_0 : i32, i32
  }
  func.func @transform_4(%arg0: i32) -> (i32, i32) {
    %c0_i32 = arith.constant 0 : i32
    %c0_i32_0 = arith.constant 0 : i32
    %c0_i32_1 = arith.constant 0 : i32
    return %c0_i32, %c0_i32_0 : i32, i32
  }
  func.func @transform_5(%arg0: i32) -> (i32, i32) {
    %c0_i32 = arith.constant 0 : i32
    %c0_i32_0 = arith.constant 0 : i32
    %c0_i32_1 = arith.constant 0 : i32
    return %c0_i32, %c0_i32_0 : i32, i32
  }
  func.func @transform_6(%arg0: i32) -> (i32, i32) {
    %c0_i32 = arith.constant 0 : i32
    %c0_i32_0 = arith.constant 0 : i32
    %c0_i32_1 = arith.constant 0 : i32
    return %c0_i32, %c0_i32_0 : i32, i32
  }
  func.func @transform_7(%arg0: i32) -> (i32, i32) {
    %c0_i32 = arith.constant 0 : i32
    %c0_i32_0 = arith.constant 0 : i32
    return %arg0, %c0_i32 : i32, i32
  }
}

</mosaic_0001>

<bundles_post_ra>
// kernel: tpu_custom_call.1
= control target key start
LH: loop header
LB: loop body
LE: loop exit
PB: predicated region body
PF: predicated region fallthrough
CT: control target
= control target key end

     0   :  { %12 = vsyncpa [#allocation3], 0  ;;  %s1584_s0 = inlined_call_operand.vmem [shape: f32[16,7], index: 0, kind: input, shape index: {}]   ;;  %s1585_s1 = inlined_call_operand.vmem [shape: f32[7,128], index: 1, kind: input, shape index: {}]   ;;  %s1586_s2 = inlined_call_operand.vmem [shape: f32[128,128], index: 2, kind: input, shape index: {}]   ;;  %s1587_s3 = inlined_call_operand.vmem [shape: f32[128,64], index: 3, kind: input, shape index: {}]   ;;  %s1588_s4 = inlined_call_operand.vmem [shape: f32[64,64], index: 4, kind: input, shape index: {}]   ;;  %s1589_s5 = inlined_call_operand.hbm [shape: f32[64,64], index: 5, kind: input, shape index: {}]   ;;  %s1590_s6 = inlined_call_operand.vmem [shape: f32[8,128], index: 6, kind: input, shape index: {}]   ;;  %s1591_s7 = inlined_call_operand.hbm [shape: f32[16,64], index: 7, kind: output, shape index: {}]  }
   0x1   :  { %13 = vsyncpa [#allocation4], 0 }
   0x2   :  { %15 = vsyncpa [#allocation4 + $0x1], 0  ;;  %s1253_s24 = smov 0   ;;  %s1255_s25 = smov 0  }
   0x3   :  { %s1257_s26 = smov 0   ;;  %s1259_s27 = smov 0  }
   0x4 LB: > { %s1274_s28 = sadd.s32 4294967295, %s1204_s27   ;;  %s868_s29 = sadd.s32 4294967294, %s1204_s27   ;;  %s1204_s27 = sphi %s1259_s27, %s1599_s27   ;;  %s1200_s26 = sphi %s1257_s26, %s1598_s26   ;;  %s1196_s25 = sphi %s1255_s25, %s1597_s25   ;;  %s1192_s24 = sphi %s1253_s24, %s1596_s24  }
   0x5   : > { %s1278_s30 = sadd.s32 1, %s1204_s27   ;;  %s180_s8 = sadd.s32 1, %s1200_s26 }
   0x6   : > { %s177_s9 = ssub.s32 %s1204_s27, %s1278_s30  ;;  %p190_p0 = scmp.ne.s32.totalorder %s1200_s26, %s1196_s25 }
   0x7   : > { %p178_p1 = scmp.eq.s32.totalorder %s177_s9, 0  ;;  %p191_p2 = scmp.eq.s32.totalorder %s1274_s28, 1 }
   0x8   : > { %p196_p3 = scmp.ne.s32.totalorder %s1196_s25, %s1192_s24  ;;  %p197_p4 = scmp.eq.s32.totalorder %s868_s29, 1 }
   0x9   : > { %s1289_s10 = scalar_select %p178_p1, %s1200_s26, %s180_s8  }
   0xa   : > { %p1291_p5 = por %p191_p2, %p190_p0  ;;  %p1295_p6 = por %p197_p4, %p196_p3 }
   0xb   : > { %p869_p7 = scmp.ge.s32.totalorder %s1204_s27, 1  ;;  %p204_p8 = scmp.lt.s32.totalorder %s1204_s27, 3 }
   0xc   : > { %s1593_s12 = scalar_select %p1295_p6, 1, 0 }
   0xd   : > { %p1065_p9 = scmp.eq.s32.totalorder %s1274_s28, 0  ;;  %p1302_p10 = pnand %p869_p7, %p204_p8 }
   0xe   : > { %s1206_s14 = smov [#allocation2]  }
   0xf   : > { %s228_s15 = sshll.u32 %s1206_s14, 4  ;;  %p1057_p11 = pneg %p1302_p10  ;;  %s229_s15 = int_to_ptr.vmem [resolvable:$true] %s228_s15 }
  0x10   : > { %s1125_s16 = scalar_lea.vmem %s229_s15, 1024  ;;  %p1133_p3 = scmp.lt.s32.totalorder %s229_s15, %s229_s15 }
  0x11   : > { %p1058_p12 = pnand %p1065_p9, %p1057_p11  ;;  %p1126_p0 = scmp.ne.s32.totalorder %s229_s15, %s1125_s16 }
  0x12   : > { %p1134_p4 = scmp.lt.s32.totalorder %s1125_s16, %s1125_s16 }
  0x13   : > { %p1116_p13 = pneg %p1058_p12 }
  0x14   : > { %p1135_p6 = por %p1134_p4, %p1133_p3 }
  0x15   : > { %p1128_p1 = pnand %p1126_p0, %p1116_p13 }
  0x17   : > { %p1129_p2 = pneg %p1128_p1 }
  0x19   : > { %p1136_p7 = pnand %p1135_p6, %p1129_p2 }
  0x1b   : > { %1139 = shalt.err (!%p1136_p7)
}
  0x1c   : > { %s1207_s17 = smov 128   ;;  %s1208_s18 = smov 8  }
  0x1d   : > { %1060 = dma.hbm_to_vmem [thread:$0]  (!%p1058_p12), %s1589_s5, 1024, %s229_s15, [#allocation3], %s1207_s17, %s1207_s17, %s1208_s18  }
  0x1e   : > { %254 = sbr.rel (%p1302_p10) target bundleno = 1406 (0x57e), region = 48 }
  0x23   : > { %1183 = dma.done.wait (%p1065_p9), [#allocation3], 1024  }
  0x24   : > { %1185 = vsyncadd (%p1065_p9), [#allocation3], 4294966272  ;;  %p285_p8 = scmp.lt.s32.totalorder %s1274_s28, 1  ;;  %v1209_v0 = vmov 0.0   ;;  %vm1210_vm0 = vmmov 0   ;;  %vm300_vm1 = vcmask 1046528   ;;  %v292_v3 = vlaneseq }
  0x25   : > { %938 = vmatprep.subr.mxu0 %v1209_v0  ;;  %940 = vmatprep.mubr.msk.f32.mxu0 %vm1210_vm0, %v1209_v0  ;;  %vm296_vm2 = vcmask 56320   ;;  %v291_v1 = vld [vmem:[%s1585_s1] sm:$0x7f]  ;;  %v416_v12 = vld [vmem:[%s1586_s2 + $0x78] sm:$0xff]  ;;  %v415_v13 = vld [vmem:[%s1586_s2 + $0x70] sm:$0xff]  ;;  %s1211_s9 = smov 64  }
  0x26   : > { %s286_s21 = scalar_select %p285_p8, %s1274_s28, 1  ;;  %943 = vmatprep.subr.mxu1 %v1209_v0  ;;  %975 = vmatprep.mubr.msk.f32.mxu1 %vm1210_vm0, %v1209_v0  ;;  %v1336_v4 = vshrl.u32 %v292_v3, 7  ;;  %v1342_v6 = vld [vmem:[%s1590_s6] sm:$0xff]  ;;  %v414_v14 = vld [vmem:[%s1586_s2 + $0x68] sm:$0xff]  ;;  %v412_v16 = vld [vmem:[%s1586_s2 + $0x58] sm:$0xff]  ;;  %vm622_vm4 = vcmask 523264  }
  0x27   : > { %939 = vmatpush3.msk.msra.mxu0 %vm300_vm1, %v291_v1  ;;  %944 = vmatpush3.msra.mxu1 %v416_v12  ;;  %v413_v15 = vld [vmem:[%s1586_s2 + $0x60] sm:$0xff]  ;;  %v411_v17 = vld [vmem:[%s1586_s2 + $0x50] sm:$0xff]  ;;  %v410_v18 = vld [vmem:[%s1586_s2 + $0x48] sm:$0xff]  ;;  %s282_s13 = sand.u32 1, %s1196_s25   ;;  %s881_s15 = sshll.u32 %s1274_s28, 7 }
  0x28   : > { %s875_s22 = sshll.u32 %s286_s21, 3  ;;  %978 = vmatprep.subr.mxu0 %v1209_v0  ;;  %v294_v5 = vsub.s32 0, %v1336_v4  ;;  %945 = vmatprep.subr.mxu1 %v1209_v0  ;;  %v409_v19 = vld [vmem:[%s1586_s2 + $0x40] sm:$0xff]  ;;  %v408_v20 = vld [vmem:[%s1586_s2 + $0x38] sm:$0xff]  ;;  %v407_v21 = vld [vmem:[%s1586_s2 + $0x30] sm:$0xff]  ;;  %v390_v35 = vsub.s32 1, %v1336_v4  ;;  %s1548_s20 = scalar_lea.hbm %s1591_s7, %s881_s15 }
  0x29   : > { %s288_s8 = scalar_lea.vmem %s1584_s0, %s875_s22  ;;  %946 = vmatpush3.msra.mxu1 %v415_v13  ;;  %v406_v22 = vld [vmem:[%s1586_s2 + $0x28] sm:$0xff]  ;;  %v405_v23 = vld [vmem:[%s1586_s2 + $0x20] sm:$0xff]  ;;  %v404_v24 = vld [vmem:[%s1586_s2 + $0x18] sm:$0xff]  ;;  %v395_v36 = vsub.s32 2, %v1336_v4  ;;  %v419_v46 = vsub.s32 3, %v1336_v4  ;;  %s874_s14 = sshll.u32 %s282_s13, 3 }
  0x2a   : > { %v289_v2 = vld [vmem:[%s288_s8] sm:$0xff]  ;;  %v295_v7 = vrot.slane %v1342_v6, %v294_v5  ;;  %947 = vmatprep.subr.mxu1 %v1209_v0  ;;  %v403_v25 = vld [vmem:[%s1586_s2 + $0x10] sm:$0xff]  ;;  %v402_v26 = vld [vmem:[%s1586_s2 + $0x8] sm:$0xff]  ;;  %v391_v38 = vrot.slane %v1342_v6, %v390_v35  ;;  %v537_v35 = vsub.s32 6, %v1336_v4  ;;  %s284_s16 = scalar_lea.vmem [#allocation5], %s874_s14  ;;  %s784_s21 = scalar_lea.sflag [#allocation4], %s282_s13 }
  0x2b   : > { %941 = vmatmul.mubr.msk.f32.vlgmr.msra.gmra.mxu0 %vm296_vm2, %v289_v2  ;;  %948 = vmatpush3.msra.mxu1 %v414_v14  ;;  %v401_v27 = vld [vmem:[%s1586_s2] sm:$0xff]  ;;  %v396_v41 = vrot.slane %v1342_v6, %v395_v36  ;;  %v420_v47 = vrot.slane %v1342_v6, %v419_v46  ;;  %v534_v52 = vld [vmem:[%s1587_s3 + $0x78] sm:$0xff]  ;;  %v533_v53 = vld [vmem:[%s1587_s3 + $0x70] sm:$0xff]  ;;  %v506_v14 = vsub.s32 4, %v1336_v4  ;;  %s797_s17 = sshll.u32 %s284_s16, 4  ;;  %s1212_s28 = smov [#allocation5]   ;;  %s798_s17 = int_to_ptr.vmem [resolvable:$true] %s797_s17 }
  0x2c   : > { %1010 = vmatprep.mubr.msk.f32.mxu0 %vm1210_vm0, %v1209_v0  ;;  %949 = vmatprep.subr.mxu1 %v1209_v0  ;;  %v532_v54 = vld [vmem:[%s1587_s3 + $0x68] sm:$0xff]  ;;  %v531_v55 = vld [vmem:[%s1587_s3 + $0x60] sm:$0xff]  ;;  %v530_v56 = vld [vmem:[%s1587_s3 + $0x58] sm:$0xff]  ;;  %s1140_s22 = scalar_lea.vmem %s798_s17, 128  ;;  %s1144_s23 = sshll.u32 %s1212_s28, 4  ;;  %s1145_s23 = int_to_ptr.vmem [resolvable:$false] %s1144_s23 }
  0x2d   : > { %950 = vmatpush3.msra.mxu1 %v413_v15  ;;  %979 = vmatpush3.msra.mxu0 %v534_v52  ;;  %v529_v57 = vld [vmem:[%s1587_s3 + $0x50] sm:$0xff]  ;;  %v528_v58 = vld [vmem:[%s1587_s3 + $0x48] sm:$0xff]  ;;  %v527_v59 = vld [vmem:[%s1587_s3 + $0x40] sm:$0xff]  ;;  %v511_v15 = vsub.s32 5, %v1336_v4  ;;  %p1141_p6 = scmp.ne.s32.totalorder %s798_s17, %s1140_s22  ;;  %s1146_s29 = scalar_lea.vmem %s1145_s23, 256 }
  0x2e   : > { %951 = vmatprep.subr.mxu1 %v1209_v0  ;;  %980 = vmatprep.subr.mxu0 %v1209_v0  ;;  %v526_v60 = vld [vmem:[%s1587_s3 + $0x38] sm:$0xff]  ;;  %v525_v61 = vld [vmem:[%s1587_s3 + $0x30] sm:$0xff]  ;;  %v524_v62 = vld [vmem:[%s1587_s3 + $0x28] sm:$0xff]  ;;  %p1147_p11 = scmp.lt.s32.totalorder %s798_s17, %s1145_s23  ;;  %p1148_p12 = scmp.lt.s32.totalorder %s1146_s29, %s1140_s22 }
  0x2f   : > { %952 = vmatpush3.msra.mxu1 %v412_v16  ;;  %981 = vmatpush3.msra.mxu0 %v533_v53  ;;  %v523_v63 = vld [vmem:[%s1587_s3 + $0x20] sm:$0xff]  ;;  %v522_v1 = vld [vmem:[%s1587_s3 + $0x18] sm:$0xff]  ;;  %v521_v2 = vld [vmem:[%s1587_s3 + $0x10] sm:$0xff]  ;;  %p1142_p9 = pnand %p1141_p6, %p1291_p5 }
  0x30   : > { %953 = vmatprep.subr.mxu1 %v1209_v0  ;;  %982 = vmatprep.subr.mxu0 %v1209_v0  ;;  %v520_v3 = vld [vmem:[%s1587_s3 + $0x8] sm:$0xff]  ;;  %v519_v5 = vld [vmem:[%s1587_s3] sm:$0xff]  ;;  %p1149_p13 = por %p1148_p12, %p1147_p11 }
  0x31   : > { %954 = vmatpush3.msra.mxu1 %v411_v17  ;;  %983 = vmatpush3.msra.mxu0 %v532_v54  ;;  %v507_v17 = vrot.slane %v1342_v6, %v506_v14  ;;  %v610_v36 = vld [vmem:[%s1588_s4] sm:$0xff]  ;;  %p1143_p10 = pneg %p1142_p9 }
  0x32   : > { %955 = vmatprep.subr.mxu1 %v1209_v0  ;;  %984 = vmatprep.subr.mxu0 %v1209_v0 }
  0x33   : > { %956 = vmatpush3.msra.mxu1 %v410_v18  ;;  %985 = vmatpush3.msra.mxu0 %v531_v55  ;;  %v707_v55 = vsub.s32 7, %v1336_v4  ;;  %p1150_p0 = pnand %p1149_p13, %p1143_p10 }
  0x34   : > { %957 = vmatprep.subr.mxu1 %v1209_v0  ;;  %986 = vmatprep.subr.mxu0 %v1209_v0 }
  0x35   : > { %958 = vmatpush3.msra.mxu1 %v409_v19  ;;  %987 = vmatpush3.msra.mxu0 %v530_v56  ;;  %v708_v56 = vrot.slane %v1342_v6, %v707_v55 }
  0x36   : > { %959 = vmatprep.subr.mxu1 %v1209_v0  ;;  %988 = vmatprep.subr.mxu0 %v1209_v0 }
  0x37   : > { %960 = vmatpush3.msra.mxu1 %v408_v20  ;;  %989 = vmatpush3.msra.mxu0 %v529_v57  ;;  %v512_v20 = vrot.slane %v1342_v6, %v511_v15 }
  0x38   : > { %961 = vmatprep.subr.mxu1 %v1209_v0  ;;  %990 = vmatprep.subr.mxu0 %v1209_v0 }
  0x39   : > { %962 = vmatpush3.msra.mxu1 %v407_v21  ;;  %991 = vmatpush3.msra.mxu0 %v528_v58 }
  0x3a   : > { %963 = vmatprep.subr.mxu1 %v1209_v0  ;;  %992 = vmatprep.subr.mxu0 %v1209_v0 }
  0x3b   : > { %964 = vmatpush3.msra.mxu1 %v406_v22  ;;  %993 = vmatpush3.msra.mxu0 %v527_v59 }
  0x3c   : > { %965 = vmatprep.subr.mxu1 %v1209_v0  ;;  %994 = vmatprep.subr.mxu0 %v1209_v0 }
  0x3d   : > { %966 = vmatpush3.msra.mxu1 %v405_v23  ;;  %995 = vmatpush3.msra.mxu0 %v526_v60 }
  0x3e   : > { %967 = vmatprep.subr.mxu1 %v1209_v0  ;;  %996 = vmatprep.subr.mxu0 %v1209_v0 }
  0x3f   : > { %968 = vmatpush3.msra.mxu1 %v404_v24  ;;  %997 = vmatpush3.msra.mxu0 %v525_v61 }
  0x40   : > { %969 = vmatprep.subr.mxu1 %v1209_v0  ;;  %998 = vmatprep.subr.mxu0 %v1209_v0 }
  0x41   : > { %970 = vmatpush3.msra.mxu1 %v403_v25  ;;  %999 = vmatpush3.msra.mxu0 %v524_v62 }
  0x42   : > { %971 = vmatprep.subr.mxu1 %v1209_v0  ;;  %1000 = vmatprep.subr.mxu0 %v1209_v0 }
  0x43   : > { %972 = vmatpush3.msra.mxu1 %v402_v26  ;;  %1001 = vmatpush3.msra.mxu0 %v523_v63 }
  0x44   : > { %973 = vmatprep.subr.mxu1 %v1209_v0  ;;  %1002 = vmatprep.subr.mxu0 %v1209_v0 }
  0x45   : > { %974 = vmatpush3.msra.mxu1 %v401_v27  ;;  %1003 = vmatpush3.msra.mxu0 %v522_v1 }
  0x46   : > { %1013 = vmatprep.subr.mxu1 %v1209_v0  ;;  %1004 = vmatprep.subr.mxu0 %v1209_v0 }
  0x47   : > { %1005 = vmatpush3.msra.mxu0 %v521_v2 }
  0x48   : > { %1006 = vmatprep.subr.mxu0 %v1209_v0 }
  0x49   : > { %1007 = vmatpush3.msra.mxu0 %v520_v3 }
  0x4a   : > { %1008 = vmatprep.subr.mxu0 %v1209_v0 }
  0x4b   : > { %1009 = vmatpush3.msra.mxu0 %v519_v5 }
  0x4c   : > { %1032 = vmatprep.subr.mxu0 %v1209_v0 }
  0xeb   : > { %v370_v8 = vpop.f32.mrf.mxu0 }
  0xec   : > { %v1345_v9 = vadd.f32 %v370_v8, %v295_v7 }
  0xed   : > { %v942_v10 = vpop.f32.mrf.mxu0 }
  0xee   : > { %374 = vadd.xlane.f32.xlu0 %v1345_v9  ;;  %v378_v11 = vmul.f32 %v1345_v9, %v1345_v9 }
  0xf2   : > { %379 = vadd.xlane.f32.xlu0 %v378_v11 }
 0x177   : > { %v375_v28 = vpop.xlane.xlu0 %374 }
 0x178   : > { %v377_v29 = vmul.f32 0.0078125, %v375_v28  ;;  %v617_v28 = vld [vmem:[%s1588_s4 + $0x38] sm:$0xff] }
 0x17a   : > { %v382_v31 = vmul.f32 %v377_v29, %v377_v29  ;;  %v384_v37 = vsub.f32 %v1345_v9, %v377_v29  ;;  %v616_v29 = vld [vmem:[%s1588_s4 + $0x30] sm:$0xff] }
 0x17b   : > { %v380_v30 = vpop.xlane.xlu0 %379 }
 0x17c   : > { %v381_v32 = vmul.f32 0.0078125, %v380_v30  ;;  %v615_v30 = vld [vmem:[%s1588_s4 + $0x28] sm:$0xff] }
 0x17e   : > { %v383_v33 = vsub.f32 %v381_v32, %v382_v31  ;;  %v614_v31 = vld [vmem:[%s1588_s4 + $0x20] sm:$0xff]  ;;  %v613_v32 = vld [vmem:[%s1588_s4 + $0x18] sm:$0xff] }
 0x180   : > { %v385_v34 = vadd.f32 1e-05, %v383_v33  ;;  %v612_v33 = vld [vmem:[%s1588_s4 + $0x10] sm:$0xff] }
 0x182   : > { %1106 = vrsqrt.f32 %v385_v34  ;;  %v611_v34 = vld [vmem:[%s1588_s4 + $0x8] sm:$0xff] }
 0x18f   : > { %v1107_v39 = vpop.eup %1106 }
 0x190   : > { %v387_v40 = vmul.f32 %v1107_v39, %v384_v37  ;;  %v538_v37 = vrot.slane %v1342_v6, %v537_v35  ;;  %v703_v39 = vld [vmem:[#allocation2 + $0x30] sm:$0xff] }
 0x192   : > { %v392_v42 = vmul.f32 %v391_v38, %v387_v40  ;;  %v704_v38 = vld [vmem:[#allocation2 + $0x38] sm:$0xff]  ;;  %619 = vrot.lane.b32.xlu0 %v538_v37, %s1211_s9  ;;  %v702_v40 = vld [vmem:[#allocation2 + $0x28] sm:$0xff] }
 0x194   : > { %v397_v43 = vadd.f32 %v396_v41, %v392_v42  ;;  %v701_v41 = vld [vmem:[#allocation2 + $0x20] sm:$0xff]  ;;  %v700_v42 = vld [vmem:[#allocation2 + $0x18] sm:$0xff] }
 0x196   : > { %vm398_vm3 = vcmp.gt.f32.partialorder %v397_v43, 0.0  ;;  %v399_v44 = vmul.f32 0.01, %v397_v43 }
 0x198   : > { %v400_v45 = vsel %vm398_vm3, %v397_v43, %v399_v44  ;;  %v699_v43 = vld [vmem:[#allocation2 + $0x10] sm:$0xff] }
 0x199   : > { %976 = vmatmul.mubr.f32.vlgmr.msra.gmra.mxu1 %v400_v45 }
 0x19a   : > { %1029 = vmatprep.mubr.msk.f32.mxu1 %vm1210_vm0, %v1209_v0  ;;  %1014 = vmatpush3.msra.mxu1 %v617_v28 }
 0x19b   : > { %1015 = vmatprep.subr.mxu1 %v1209_v0 }
 0x19c   : > { %1016 = vmatpush3.msra.mxu1 %v616_v29 }
 0x19d   : > { %1017 = vmatprep.subr.mxu1 %v1209_v0 }
 0x19e   : > { %1018 = vmatpush3.msra.mxu1 %v615_v30 }
 0x19f   : > { %1019 = vmatprep.subr.mxu1 %v1209_v0 }
 0x1a0   : > { %1020 = vmatpush3.msra.mxu1 %v614_v31 }
 0x1a1   : > { %1021 = vmatprep.subr.mxu1 %v1209_v0 }
 0x1a2   : > { %1022 = vmatpush3.msra.mxu1 %v613_v32 }
 0x1a3   : > { %1023 = vmatprep.subr.mxu1 %v1209_v0 }
 0x1a4   : > { %1024 = vmatpush3.msra.mxu1 %v612_v33 }
 0x1a5   : > { %1025 = vmatprep.subr.mxu1 %v1209_v0 }
 0x1a6   : > { %1026 = vmatpush3.msra.mxu1 %v611_v34 }
 0x1a7   : > { %1027 = vmatprep.subr.mxu1 %v1209_v0 }
 0x1a8   : > { %1028 = vmatpush3.msra.mxu1 %v610_v36 }
 0x259   : > { %v487_v48 = vpop.f32.mrf.mxu1 }
 0x25a   : > { %v1423_v49 = vadd.f32 %v487_v48, %v420_v47  ;;  %v698_v48 = vld [vmem:[#allocation2 + $0x8] sm:$0xff] }
 0x25b   : > { %v977_v50 = vpop.f32.mrf.mxu1 }
 0x25c   : > { %491 = vadd.xlane.f32.xlu1 %v1423_v49  ;;  %v494_v51 = vmul.f32 %v1423_v49, %v1423_v49  ;;  %v620_v50 = vpop.permute.xlu0 %619 }
 0x260   : > { %495 = vadd.xlane.f32.xlu1 %v494_v51 }
 0x2e5   : > { %v492_v7 = vpop.xlane.xlu1 %491 }
 0x2e6   : > { %v493_v8 = vmul.f32 0.0078125, %v492_v7 }
 0x2e8   : > { %v498_v10 = vmul.f32 %v493_v8, %v493_v8  ;;  %v500_v16 = vsub.f32 %v1423_v49, %v493_v8  ;;  %v697_v49 = vld [vmem:[#allocation2] sm:$0xff] }
 0x2e9   : > { %v496_v9 = vpop.xlane.xlu1 %495 }
 0x2ea   : > { %v497_v11 = vmul.f32 0.0078125, %v496_v9 }
 0x2ec   : > { %v499_v12 = vsub.f32 %v497_v11, %v498_v10 }
 0x2ee   : > { %v501_v13 = vadd.f32 1e-05, %v499_v12 }
 0x2f0   : > { %1108 = vrsqrt.f32 %v501_v13 }
 0x2fd   : > { %v1109_v18 = vpop.eup %1108 }
 0x2fe   : > { %v503_v19 = vmul.f32 %v1109_v18, %v500_v16 }
 0x300   : > { %v508_v21 = vmul.f32 %v507_v17, %v503_v19 }
 0x302   : > { %v513_v22 = vadd.f32 %v512_v20, %v508_v21 }
 0x304   : > { %v515_v23 = vmul.f32 0.70710677, %v513_v22  ;;  %v514_v25 = vmul.f32 0.5, %v513_v22 }
 0x306   : > { %1110 = verf.f32 %v515_v23 }
 0x313   : > { %v1111_v24 = vpop.eup %1110 }
 0x314   : > { %v517_v26 = vadd.f32 1.0, %v1111_v24 }
 0x316   : > { %v518_v27 = vmul.f32 %v517_v26, %v514_v25 }
 0x318   : > { %1011 = vmatmul.mubr.f32.vlgmr.msra.gmra.mxu0 %v518_v27 }
 0x319   : > { %1048 = vmatprep.mubr.msk.f32.mxu0 %vm1210_vm0, %v1209_v0  ;;  %1033 = vmatpush3.msra.mxu0 %v704_v38 }
 0x31a   : > { %1034 = vmatprep.subr.mxu0 %v1209_v0 }
 0x31b   : > { %1035 = vmatpush3.msra.mxu0 %v703_v39 }
 0x31c   : > { %1036 = vmatprep.subr.mxu0 %v1209_v0 }
 0x31d   : > { %1037 = vmatpush3.msra.mxu0 %v702_v40 }
 0x31e   : > { %1038 = vmatprep.subr.mxu0 %v1209_v0 }
 0x31f   : > { %1039 = vmatpush3.msra.mxu0 %v701_v41 }
 0x320   : > { %1040 = vmatprep.subr.mxu0 %v1209_v0 }
 0x321   : > { %1041 = vmatpush3.msra.mxu0 %v700_v42 }
 0x322   : > { %1042 = vmatprep.subr.mxu0 %v1209_v0 }
 0x323   : > { %1043 = vmatpush3.msra.mxu0 %v699_v43 }
 0x324   : > { %1044 = vmatprep.subr.mxu0 %v1209_v0 }
 0x325   : > { %1045 = vmatpush3.msra.mxu0 %v698_v48 }
 0x326   : > { %1046 = vmatprep.subr.mxu0 %v1209_v0 }
 0x327   : > { %1047 = vmatpush3.msra.mxu0 %v697_v49 }
 0x3d8   : > { %v605_v44 = vpop.f32.mrf.mxu0 }
 0x3d9   : > { %v606_v45 = vadd.f32 %v605_v44, %v538_v37 }
 0x3da   : > { %v1012_v46 = vpop.f32.mrf.mxu0 }
 0x3db   : > { %1112 = vtanh.f32 %v606_v45 }
 0x3e8   : > { %v1113_v47 = vpop.eup %1112 }
 0x3e9   : > { %1030 = vmatmul.mubr.msk.f32.vlgmr.msra.gmra.mxu1 %vm622_vm4, %v1113_v47 }
 0x4a9   : > { %v692_v51 = vpop.f32.mrf.mxu1 }
 0x4aa   : > { %v693_v52 = vadd.f32 %v692_v51, %v620_v50 }
 0x4ab   : > { %v1031_v53 = vpop.f32.mrf.mxu1 }
 0x4ac   : > { %v696_v54 = vmax.f32 %v693_v52, 0.0 }
 0x4ae   : > { %1049 = vmatmul.mubr.msk.f32.vlgmr.msra.gmra.mxu0 %vm622_vm4, %v696_v54 }
 0x56e   : > { %v778_v0 = vpop.f32.mrf.mxu0 }
 0x56f   : > { %v779_v57 = vadd.f32 %v778_v0, %v708_v56 }
 0x570   : > { %v1050_v58 = vpop.f32.mrf.mxu0 }
 0x571   : > { %782 = vst.msk [vmem:[%s284_s16] sm:$0xff] %vm622_vm4, %v779_v57 }
 0x572   : > { %1153 = shalt.err (!%p1150_p0)
}
 0x573   : > { %s1154_s8 = scalar_lea.hbm %s1548_s20, 128  ;;  %s1158_s14 = scalar_lea.hbm %s1591_s7, 256 }
 0x574   : > { %p1155_p1 = scmp.ne.s32.totalorder %s1548_s20, %s1154_s8  ;;  %p1159_p4 = scmp.lt.s32.totalorder %s1548_s20, %s1591_s7 }
 0x575   : > { %p1160_p7 = scmp.lt.s32.totalorder %s1158_s14, %s1154_s8 }
 0x576   : > { %p1156_p2 = pnand %p1155_p1, %p1291_p5 }
 0x577   : > { %p1161_p8 = por %p1160_p7, %p1159_p4 }
 0x578   : > { %p1157_p3 = pneg %p1156_p2 }
 0x57a   : > { %p1162_p6 = pnand %p1161_p8, %p1157_p3 }
 0x57c   : > { %1165 = shalt.err (!%p1162_p6)
}
 0x57d   : > { %1055 = dma.vmem_to_hbm [thread:$0]  (%p1291_p5), %s798_s17, 128, %s1548_s20, %s784_s21  }
 0x57e PF: > { %p1067_p9 = scmp.ge.s32.totalorder %s1204_s27, 2  ;;  %s809_s18 = sand.u32 1, %s1192_s24  }
 0x57f   : > { %p1595_p10 = scmp.ne.s32.totalorder %s1593_s12, 0  ;;  %s810_s19 = scalar_lea.sflag [#allocation4], %s809_s18 }
 0x581   : > { %p1062_p11 = pnand %p1067_p9, %p1595_p10 }
 0x583   : > { %p1063_p12 = pneg %p1062_p11 }
 0x585   : > { %1187 = dma.done.wait (%p1063_p12), %s810_s19, 128  }
 0x586   : > { %1189 = vsyncadd (%p1063_p12), %s810_s19, 4294967168  ;;  %p18_p13 = scmp.ge.s32.totalorder %s1278_s30, 4   ;;  %s1596_s24 = smov %s1196_s25 }
 0x587   : > { %s1597_s25 = smov %s1200_s26  ;;  %s1598_s26 = smov %s1289_s10 }
 0x588   : > { %s1599_s27 = smov %s1278_s30  ;;  %20 = sbr.rel (!%p18_p13) target bundleno = 4 (0x4), region = 88 }
 0x58d   :  { %815 = vsyncpa [#allocation3], 1 }
 0x58e   :  { %817 = vsyncpa [#allocation3 + $0x1], 1 }
 0x58f   :  { %818 = vsyncpa [#allocation4], 1 }
 0x590   :  { %820 = vsyncpa [#allocation4 + $0x1], 1 }

</bundles_post_ra>
